<compile_context>
chip_gen: v7x
topology: tpu7x:2x2x1
jax: 0.10.0
libtpu: 0.0.40
codegen_flags: <defaults>
</compile_context>

<pallas_src>
import math
import jax
import jax.numpy as jnp
from jax.experimental import pallas as pl
from jax.experimental.pallas import tpu as pltpu

_SUBLANE = 8


def _round_up(x, m):
    return ((x + m - 1) // m) * m


# ---------------- kernels ----------------

def linear_nobias_kernel(x_ref, wt_ref, o_ref):
    # Canonical (M, K) @ (K, N) MXU matmul with f32 accumulation.
    # K / N need not be 128-multiples: Mosaic pads in-vreg; the (possibly
    # narrow) output store is a masked vst, which is cheaper than an extra
    # HBM pad/slice pass around the kernel.
    o_ref[...] = jax.lax.dot_general(
        x_ref[...], wt_ref[...],
        dimension_numbers=(((1,), (0,)), ((), ())),
        preferred_element_type=jnp.float32,
    ).astype(o_ref.dtype)


def diagonal_linear_kernel(x_ref, w_ref, o_ref):
    # y = x @ diag(w)^T == x * w.  Do the VPU math in f32 (v5e has no bf16
    # VALU); for f32 inputs the casts are no-ops.
    o_ref[...] = (
        x_ref[...].astype(jnp.float32) * w_ref[...].astype(jnp.float32)
    ).astype(o_ref.dtype)


# ---------------- tiling helpers ----------------

def _vmem_limit_bytes():
    """Generation-dependent VMEM limit: ~75% of physical VMEM, capped at 96 MiB.

    -> ~96 MiB on v5e/v6e (128 MiB parts), ~48 MiB on v7x (64 MiB per TC).
    """
    cap = 64 * 1024 * 1024  # conservative fallback (v7x per-TC size)
    try:
        info = pltpu.get_tpu_info()
        cap = int(getattr(info, "vmem_capacity_bytes", cap))
    except Exception:
        pass
    return min((cap * 3) // 4, 96 * 1024 * 1024)


def _pick_tile_n(n_rows, row_stream_bytes, resident_bytes, vmem_limit):
    """Largest batch tile (multiple of 8, <=2048 rows) whose double-buffered
    streamed rows fit in VMEM after reserving the (double-buffered) resident
    weight block plus headroom.  Shrinks the tile when the batch is large so
    the grid has >= 4 steps (lets v7x shard the parallel axis over both TCs).
    """
    budget = vmem_limit - 2 * resident_bytes - (4 << 20)
    per_row = 2 * max(row_stream_bytes, 1)        # 2x: double-buffered in + out
    rows = budget // per_row
    rows = max(_SUBLANE, (rows // _SUBLANE) * _SUBLANE)
    # TODO(synk): if even an 8-row stripe (or the resident weight) exceeds the
    # budget, tile the feature / out_features axes instead of hoping it fits.
    tile_n = int(min(2048, rows, n_rows))
    while tile_n > 512 and pl.cdiv(n_rows, tile_n) < 4:
        tile_n = max(512, _round_up(tile_n // 2, _SUBLANE))
    return tile_n


# ---------------- forward implementations ----------------

def _pad_rows(x, n_pad):
    n = x.shape[0]
    if n_pad != n:
        x = jnp.pad(x, ((0, n_pad - n), (0, 0)))
    return x


def _dense_forward(x, wt, out_dtype):
    """y = x @ wt, wt pre-transposed to (in_features, out_features)."""
    N, in_f = x.shape
    assert wt.shape[0] == in_f
    out_f = wt.shape[1]

    n_pad = _round_up(max(N, 1), _SUBLANE)        # sublane pad only (usually a no-op)
    x = _pad_rows(x, n_pad)

    vmem_limit = _vmem_limit_bytes()
    row_bytes = in_f * x.dtype.itemsize + out_f * jnp.dtype(out_dtype).itemsize
    resident = in_f * out_f * wt.dtype.itemsize
    tile_n = _pick_tile_n(n_pad, row_bytes, resident, vmem_limit)

    y = pl.pallas_call(
        linear_nobias_kernel,
        out_shape=jax.ShapeDtypeStruct((n_pad, out_f), out_dtype),
        grid=(pl.cdiv(n_pad, tile_n),),
        in_specs=[
            pl.BlockSpec((tile_n, in_f), lambda i: (i, 0)),   # streamed batch tiles
            pl.BlockSpec((in_f, out_f), lambda i: (0, 0)),    # VMEM-resident weight
        ],
        out_specs=pl.BlockSpec((tile_n, out_f), lambda i: (i, 0)),
        compiler_params=pltpu.CompilerParams(
            dimension_semantics=("parallel",),
            vmem_limit_bytes=vmem_limit,
        ),
    )(x, wt)
    return y if n_pad == N else y[:N]


def _diag_forward(x, w_row, out_dtype):
    """y = x * w, w_row pre-reshaped to (1, features)."""
    N, in_f = x.shape
    assert w_row.shape == (1, in_f)

    n_pad = _round_up(max(N, 1), _SUBLANE)
    x = _pad_rows(x, n_pad)

    vmem_limit = _vmem_limit_bytes()
    row_bytes = in_f * (x.dtype.itemsize + jnp.dtype(out_dtype).itemsize)
    resident = in_f * w_row.dtype.itemsize
    tile_n = _pick_tile_n(n_pad, row_bytes, resident, vmem_limit)

    y = pl.pallas_call(
        diagonal_linear_kernel,
        out_shape=jax.ShapeDtypeStruct((n_pad, in_f), out_dtype),
        grid=(pl.cdiv(n_pad, tile_n),),
        in_specs=[
            pl.BlockSpec((tile_n, in_f), lambda i: (i, 0)),
            pl.BlockSpec((1, in_f), lambda i: (0, 0)),        # VMEM-resident weight
        ],
        out_specs=pl.BlockSpec((tile_n, in_f), lambda i: (i, 0)),
        compiler_params=pltpu.CompilerParams(
            dimension_semantics=("parallel",),
            vmem_limit_bytes=vmem_limit,
        ),
    )(x, w_row)
    return y if n_pad == N else y[:N]


# ---------------- public API ----------------

class LinearPolicyPallas:
    """Pallas analogue of LinearPolicy.

    Weight preprocessing (transpose to (in, out) / diag reshape, optional
    compute-dtype cast) is done ONCE here, not on every forward call.
    """

    def __init__(self, weight, diagonal=False, compute_dtype=None):
        self.diagonal = diagonal
        self.compute_dtype = compute_dtype
        w = jnp.asarray(weight)
        if compute_dtype is not None:
            w = w.astype(compute_dtype)
        if diagonal:
            assert w.ndim == 1, "DiagonalLinear weight is a vector"
            self.w = w.reshape(1, -1)            # (1, D) broadcast row
        else:
            assert w.ndim == 2                   # (out, in) -> (in, out)
            self.w = w.T

    def __call__(self, x):
        out_dtype = x.dtype
        if self.compute_dtype is not None and x.dtype != self.compute_dtype:
            # TODO(synk): ideally the upstream producer already emits x in
            # compute_dtype so this cast (an extra HBM pass) disappears.
            x = x.astype(self.compute_dtype)
        if self.diagonal:
            return _diag_forward(x, self.w, out_dtype)
        return _dense_forward(x, self.w, out_dtype)


def linear_policy_forward(x, weight, diagonal=False, compute_dtype=None):
    """One-shot functional wrapper.  For repeated evaluation (rollouts) prefer
    LinearPolicyPallas so the weight transpose/cast is cached once."""
    return LinearPolicyPallas(weight, diagonal=diagonal, compute_dtype=compute_dtype)(x)


# ---------------- test ----------------

if __name__ == "__main__":
    key = jax.random.PRNGKey(0)
    k_x, k_w, k_wd, k_x2, k_w2, k_x3 = jax.random.split(key, 6)

    # --- small shapes implied by the module: LinearPolicy(inputSize=32, outputSize=16) ---
    batch, input_size, output_size = 8, 32, 16
    x = jax.random.normal(k_x, (batch, input_size), dtype=jnp.float32)

    # nn.Linear(inputSize, outputSize, bias=False) weight: (out, in), U(-sqrt(1/in), sqrt(1/in))
    bound = 1.0 / math.sqrt(input_size)
    w_full = jax.random.uniform(
        k_w, (output_size, input_size), dtype=jnp.float32, minval=-bound, maxval=bound
    )
    # DiagonalLinear weight: (out,) with out == in, U(-1, 1)
    w_diag = jax.random.uniform(
        k_wd, (input_size,), dtype=jnp.float32, minval=-1.0, maxval=1.0
    )

    # --- non-diagonal LinearPolicy (f32, exact) ---
    policy = LinearPolicyPallas(w_full, diagonal=False)
    y = jax.block_until_ready(policy(x))
    y_ref = x @ w_full.T
    assert y.shape == (batch, output_size)
    assert jnp.allclose(y, y_ref, atol=1e-5, rtol=1e-5)

    # --- diagonal LinearPolicy (f32, exact) ---
    policy_d = LinearPolicyPallas(w_diag, diagonal=True)
    yd = jax.block_until_ready(policy_d(x))
    yd_ref = x * w_diag[None, :]
    assert yd.shape == (batch, input_size)
    assert jnp.allclose(yd, yd_ref, atol=1e-5, rtol=1e-5)

    # --- ragged / multi-tile case: exercises batch tiling with a partial block ---
    N2, in2, out2 = 1200, 200, 48
    x2 = jax.random.normal(k_x2, (N2, in2), dtype=jnp.float32)
    b2 = 1.0 / math.sqrt(in2)
    w2 = jax.random.uniform(k_w2, (out2, in2), dtype=jnp.float32, minval=-b2, maxval=b2)
    y2 = jax.block_until_ready(linear_policy_forward(x2, w2, diagonal=False))
    y2_ref = x2 @ w2.T
    assert y2.shape == (N2, out2)
    assert jnp.allclose(y2, y2_ref, atol=1e-4, rtol=1e-4)

    # --- bf16 streaming (half the HBM bytes), f32 MXU accumulation ---
    policy_bf16 = LinearPolicyPallas(w2, diagonal=False, compute_dtype=jnp.bfloat16)
    y2b = jax.block_until_ready(policy_bf16(x2))
    assert y2b.shape == (N2, out2) and y2b.dtype == jnp.float32
    assert jnp.allclose(y2b, y2_ref, atol=5e-2, rtol=5e-2)

    # --- batch not a multiple of 8: exercises the sublane row-pad + row-slice path ---
    x3 = jax.random.normal(k_x3, (13, input_size), dtype=jnp.float32)
    y3 = jax.block_until_ready(policy(x3))
    assert y3.shape == (13, output_size)
    assert jnp.allclose(y3, x3 @ w_full.T, atol=1e-5, rtol=1e-5)

    print("KERNEL_OK")
</pallas_src>

<mosaic_0001>
module attributes {stable_mosaic.version = 11 : i64} {
  func.func @linear_nobias_kernel(%arg0: i32, %arg1: memref<8x32xf32, #tpu.memory_space<vmem>>, %arg2: memref<32x16xf32, #tpu.memory_space<vmem>>, %arg3: memref<8x16xf32, #tpu.memory_space<vmem>>) attributes {dimension_semantics = [#tpu.dimension_semantics<parallel>], iteration_bounds = array<i64: 1>, scalar_prefetch = 0 : i64, scratch_operands = 0 : i64, tpu.core_type = #tpu.core_type<tc>, window_params = [{transform_indices = @transform_0, window_bounds = array<i64: 8, 32>}, {pipeline_mode = #tpu.pipeline_mode<synchronous>, transform_indices = @transform_1, window_bounds = array<i64: 32, 16>}, {transform_indices = @transform_2, window_bounds = array<i64: 8, 16>}]} {
    %c0 = arith.constant 0 : index
    %c0_0 = arith.constant 0 : index
    %0 = vector.load %arg1[%c0, %c0_0] : memref<8x32xf32, #tpu.memory_space<vmem>>, vector<8x32xf32>
    %c0_1 = arith.constant 0 : index
    %c0_2 = arith.constant 0 : index
    %1 = vector.load %arg2[%c0_1, %c0_2] : memref<32x16xf32, #tpu.memory_space<vmem>>, vector<32x16xf32>
    %cst = arith.constant dense<0.000000e+00> : vector<8x16xf32>
    %2 = tpu.matmul %0, %1, %cst {dimension_numbers = #tpu.dot_dimension_numbers<[1], [0], [0], [1], [0, 0, 1, 1], [], []>} : vector<8x32xf32>, vector<32x16xf32>, vector<8x16xf32> -> vector<8x16xf32>
    %c0_3 = arith.constant 0 : index
    %c0_4 = arith.constant 0 : index
    %3 = vector.load %arg3[%c0_3, %c0_4] : memref<8x16xf32, #tpu.memory_space<vmem>>, vector<8x16xf32>
    tpu.vector_store %arg3[%c0_3, %c0_4], %2 {strides = array<i32>} : memref<8x16xf32, #tpu.memory_space<vmem>>, vector<8x16xf32>,
    return
  }
  func.func @transform_0(%arg0: i32) -> (i32, i32) {
    %c0_i32 = arith.constant 0 : i32
    %c0_i32_0 = arith.constant 0 : i32
    return %arg0, %c0_i32 : i32, i32
  }
  func.func @transform_1(%arg0: i32) -> (i32, i32) {
    %c0_i32 = arith.constant 0 : i32
    %c0_i32_0 = arith.constant 0 : i32
    %c0_i32_1 = arith.constant 0 : i32
    return %c0_i32, %c0_i32_0 : i32, i32
  }
  func.func @transform_2(%arg0: i32) -> (i32, i32) {
    %c0_i32 = arith.constant 0 : i32
    %c0_i32_0 = arith.constant 0 : i32
    return %arg0, %c0_i32 : i32, i32
  }
}

</mosaic_0001>

<bundles_post_ra>
// kernel: tpu_custom_call.1
= control target key start
LH: loop header
LB: loop body
LE: loop exit
PB: predicated region body
PF: predicated region fallthrough
CT: control target
= control target key end

     0   :  { %v158_v3 = vmov 0.0|0.0   ;;  %vm159_vm0 = vmmov 0   ;;  %v160_v6 = vmov 0.0   ;;  %s204_s0 = inlined_call_operand.vmem [shape: f32[8,32], index: 0, kind: input, shape index: {}]   ;;  %s205_s1 = inlined_call_operand.vmem [shape: f32[32,16], index: 1, kind: input, shape index: {}]   ;;  %s206_s2 = inlined_call_operand.hbm [shape: f32[8,16], index: 2, kind: output, shape index: {}]  }
   0x1   :  { %v13_v0 = vld [vmem:[%s205_s1] sm:$0xff]  ;;  %v14_v1 = vld [vmem:[%s205_s1 + $0x8] sm:$0xff]  ;;  %v15_v2 = vld [vmem:[%s205_s1 + $0x10] sm:$0xff]  ;;  %124 = vmatprep.subr.bf16.mxu0 %v158_v3  ;;  %121 = vmatprep.mubr.msk.f32.mxu0 %vm159_vm0, %v160_v6 }
   0x2   :  { %v125_v4 = vpack.c.bf16 %v14_v1, %v13_v0  ;;  %v16_v5 = vld [vmem:[%s205_s1 + $0x18] sm:$0xff] }
   0x3   :  { %7 = vsyncpa [#allocation3], 0  ;;  %v128_v7 = vpack.c.bf16 %v16_v5, %v15_v2  ;;  %v12_v8 = vld [vmem:[%s204_s0] sm:$0xff]  ;;  %vm17_vm1 = vcmask 261120   ;;  %s161_s19 = smov [#allocation2]   ;;  %vm91_vm2 = vcmask 130048  }
   0x4   :  { %126 = vmatpush3.bf16.msra.mxu0 %v125_v4  ;;  %s99_s20 = sshll.u32 %s161_s19, 4  ;;  %s100_s20 = int_to_ptr.vmem [resolvable:$true] %s99_s20 }
   0x5   :  { %127 = vmatprep.subr.bf16.mxu0 %v158_v3  ;;  %s134_s1 = scalar_lea.vmem %s100_s20, 128  ;;  %p139_p1 = scmp.lt.s32.totalorder %s100_s20, %s100_s20 }
   0x6   :  { %p135_p0 = scmp.ne.s32.totalorder %s100_s20, %s134_s1  ;;  %p140_p2 = scmp.lt.s32.totalorder %s134_s1, %s134_s1 }
   0x8   :  { %129 = vmatpush3.bf16.msra.mxu0 %v128_v7  ;;  %p141_p3 = por %p140_p2, %p139_p1 }
   0xa   :  { %p142_p4 = pnand %p141_p3, %p135_p0 }
   0xb   :  { %122 = vmatmul.mubr.msk.f32.vlgmr.msra.gmra.mrb[0].mxu0 %vm17_vm1, %v12_v8 }
  0xde   :  { %v87_v9 = vpop.f32.mrb[0].mxu0 }
  0xdf   :  { %92 = vst.msk [vmem:[#allocation2] sm:$0xff] %vm91_vm2, %v87_v9  ;;  %v123_v10 = vpop.f32.mrb[1].mxu0 }
  0xe0   :  { %145 = shalt.err (!%p142_p4)
}
  0xe1   :  { %s146_s0 = scalar_lea.hbm %s206_s2, 128 }
  0xe2   :  { %p147_p5 = scmp.ne.s32.totalorder %s206_s2, %s146_s0  ;;  %p150_p6 = scmp.lt.u32.totalorder %s146_s0, %s206_s2 }
  0xe4   :  { %p152_p7 = pnand %p150_p6, %p147_p5 }
  0xe6   :  { %155 = shalt.err (!%p152_p7)
}
  0xe7   :  { %102 = dma.vmem_to_hbm [thread:$0]  %s100_s20, 128, %s206_s2, [#allocation3]  }
  0xe8   :  { %156 = dma.done.wait [#allocation3], 128  }
  0xe9   :  { %157 = vsyncadd [#allocation3], 4294967168 }
  0xea   :  { %106 = vsyncpa [#allocation3], 1 }

</bundles_post_ra>
